<compile_context>
chip_gen: v7x
topology: tpu7x:2x2x1
jax: 0.10.0
libtpu: 0.0.40
codegen_flags: <defaults>
</compile_context>

<pallas_src>
import jax
import jax.numpy as jnp
from jax.experimental import pallas as pl
from jax.experimental.pallas import tpu as pltpu

HEIGHT = 26
WIDTH = 26
NUM_CLASSES = 5
D_IN = HEIGHT * WIDTH   # 676
H1 = 300
H2 = 100
OUT_PAD = 128           # lane-dense padded output width (sliced back to 5)
DROP_P = 0.5            # torch.nn.functional.dropout default p


def _round_up(n, m):
    return ((n + m - 1) // m) * m


def ffnn_kernel(x_ref, mask_ref,
                w1_ref, b1_ref, w2_ref, b2_ref, w3_ref, b3_ref,
                o_ref):
    # ---- linear1 + relu (clamp(min=0) is redundant with relu) ----
    # bf16 operands, f32 accumulation on the MXU.
    h1 = jnp.dot(x_ref[...], w1_ref[...],
                 preferred_element_type=jnp.float32) + b1_ref[...]
    h1 = jnp.maximum(h1, 0.0)

    # ---- dropout(p=0.5, training=True): precomputed scale-mask (0.0 or 2.0) ----
    h1 = h1 * mask_ref[...]

    # ---- linear2 + relu ----
    h2 = jnp.dot(h1.astype(jnp.bfloat16), w2_ref[...],
                 preferred_element_type=jnp.float32) + b2_ref[...]
    h2 = jnp.maximum(h2, 0.0)

    # ---- linear3 + relu (padded out columns are zero-weight -> relu(0)=0) ----
    y = jnp.dot(h2.astype(jnp.bfloat16), w3_ref[...],
                preferred_element_type=jnp.float32) + b3_ref[...]
    o_ref[...] = jnp.maximum(y, 0.0)


def feed_forward_nn(x, params, dropout_key, tb=512):
    """x: (B, 676) float32.  params: (w1,b1,w2,b2,w3,b3), weights stored (in,out)."""
    B = x.shape[0]
    w1, b1, w2, b2, w3, b3 = params

    # Batch tile: multiple of 8 sublanes, capped at 512 rows (~0.66 MiB bf16 x-tile).
    TB = min(tb, _round_up(B, 8))
    B_pad = _round_up(B, TB)
    if B_pad != B:
        x = jnp.pad(x, ((0, B_pad - B), (0, 0)))

    # Dropout scale-mask: keep w.p. (1-p), scaled by 1/(1-p).
    # TODO(synk): random stream comes from jax.random, not torch's RNG —
    # distributionally equivalent, not bit-identical to the PyTorch reference.
    keep = jax.random.bernoulli(dropout_key, 1.0 - DROP_P, (B_pad, H1))
    drop_mask = keep.astype(jnp.float32) * (1.0 / (1.0 - DROP_P))

    # bf16 MXU operands (f32 accumulate in-kernel); pad W3/b3 to 128 out cols.
    x_bf = x.astype(jnp.bfloat16)
    w1_bf = w1.astype(jnp.bfloat16)
    w2_bf = w2.astype(jnp.bfloat16)
    w3_pad = jnp.pad(w3, ((0, 0), (0, OUT_PAD - NUM_CLASSES))).astype(jnp.bfloat16)
    b3_pad = jnp.pad(b3, ((0, 0), (0, OUT_PAD - NUM_CLASSES))).astype(jnp.float32)

    grid = (B_pad // TB,)

    flops = 2 * B_pad * (D_IN * H1 + H1 * H2 + H2 * OUT_PAD)
    bytes_accessed = (
        x_bf.size * 2 + drop_mask.size * 4
        + w1_bf.size * 2 + w2_bf.size * 2 + w3_pad.size * 2
        + b1.size * 4 + b2.size * 4 + b3_pad.size * 4
        + B_pad * OUT_PAD * 4)

    out = pl.pallas_call(
        ffnn_kernel,
        out_shape=jax.ShapeDtypeStruct((B_pad, OUT_PAD), jnp.float32),
        grid_spec=pltpu.PrefetchScalarGridSpec(
            num_scalar_prefetch=0,
            grid=grid,
            in_specs=[
                pl.BlockSpec((TB, D_IN),        lambda i: (i, 0)),  # x tile
                pl.BlockSpec((TB, H1),          lambda i: (i, 0)),  # dropout mask tile
                pl.BlockSpec((D_IN, H1),        lambda i: (0, 0)),  # w1 (resident)
                pl.BlockSpec((1, H1),           lambda i: (0, 0)),  # b1
                pl.BlockSpec((H1, H2),          lambda i: (0, 0)),  # w2
                pl.BlockSpec((1, H2),           lambda i: (0, 0)),  # b2
                pl.BlockSpec((H2, OUT_PAD),     lambda i: (0, 0)),  # w3 (padded)
                pl.BlockSpec((1, OUT_PAD),      lambda i: (0, 0)),  # b3 (padded)
            ],
            out_specs=pl.BlockSpec((TB, OUT_PAD), lambda i: (i, 0)),
        ),
        compiler_params=pltpu.CompilerParams(
            dimension_semantics=("parallel",)),
        cost_estimate=pl.CostEstimate(
            flops=flops, transcendentals=0, bytes_accessed=bytes_accessed),
    )(x_bf, drop_mask, w1_bf, b1, w2_bf, b2, w3_pad, b3_pad)

    return out[:B, :NUM_CLASSES]


def init_params(key):
    """Matches torch.nn.Linear default init: U(-1/sqrt(fan_in), 1/sqrt(fan_in))."""
    def linear(key, fan_in, fan_out):
        kw, kb = jax.random.split(key)
        bound = 1.0 / jnp.sqrt(jnp.float32(fan_in))
        w = jax.random.uniform(kw, (fan_in, fan_out), jnp.float32, -bound, bound)
        b = jax.random.uniform(kb, (1, fan_out), jnp.float32, -bound, bound)
        return w, b

    k1, k2, k3 = jax.random.split(key, 3)
    w1, b1 = linear(k1, D_IN, H1)
    w2, b2 = linear(k2, H1, H2)
    w3, b3 = linear(k3, H2, NUM_CLASSES)
    return (w1, b1, w2, b2, w3, b3)


if __name__ == "__main__":
    key = jax.random.PRNGKey(0)
    k_params, k_x, k_drop = jax.random.split(key, 3)

    params = init_params(k_params)
    B = 8
    x = jax.random.normal(k_x, (B, D_IN), dtype=jnp.float32)

    y = feed_forward_nn(x, params, dropout_key=k_drop)
    y = jax.block_until_ready(y)

    assert y.shape == (B, NUM_CLASSES)
    assert y.dtype == jnp.float32
    assert bool(jnp.all(y >= 0.0))   # final relu / clamp(min=0)
    print("KERNEL_OK")
</pallas_src>

<mosaic_0001>
module attributes {stable_mosaic.version = 11 : i64} {
  func.func @ffnn_kernel(%arg0: i32, %arg1: memref<8x676xbf16, #tpu.memory_space<vmem>>, %arg2: memref<8x300xf32, #tpu.memory_space<vmem>>, %arg3: memref<676x300xbf16, #tpu.memory_space<vmem>>, %arg4: memref<1x300xf32, #tpu.memory_space<vmem>>, %arg5: memref<300x100xbf16, #tpu.memory_space<vmem>>, %arg6: memref<1x100xf32, #tpu.memory_space<vmem>>, %arg7: memref<100x128xbf16, #tpu.memory_space<vmem>>, %arg8: memref<1x128xf32, #tpu.memory_space<vmem>>, %arg9: memref<8x128xf32, #tpu.memory_space<vmem>>) attributes {dimension_semantics = [#tpu.dimension_semantics<parallel>], iteration_bounds = array<i64: 1>, scalar_prefetch = 0 : i64, scratch_operands = 0 : i64, tpu.core_type = #tpu.core_type<tc>, window_params = [{transform_indices = @transform_0, window_bounds = array<i64: 8, 676>}, {transform_indices = @transform_1, window_bounds = array<i64: 8, 300>}, {pipeline_mode = #tpu.pipeline_mode<synchronous>, transform_indices = @transform_2, window_bounds = array<i64: 676, 300>}, {pipeline_mode = #tpu.pipeline_mode<synchronous>, transform_indices = @transform_3, window_bounds = array<i64: 1, 300>}, {pipeline_mode = #tpu.pipeline_mode<synchronous>, transform_indices = @transform_4, window_bounds = array<i64: 300, 100>}, {pipeline_mode = #tpu.pipeline_mode<synchronous>, transform_indices = @transform_5, window_bounds = array<i64: 1, 100>}, {pipeline_mode = #tpu.pipeline_mode<synchronous>, transform_indices = @transform_6, window_bounds = array<i64: 100, 128>}, {pipeline_mode = #tpu.pipeline_mode<synchronous>, transform_indices = @transform_7, window_bounds = array<i64: 1, 128>}, {transform_indices = @transform_8, window_bounds = array<i64: 8, 128>}]} {
    %c0 = arith.constant 0 : index
    %c0_0 = arith.constant 0 : index
    %0 = vector.load %arg1[%c0, %c0_0] : memref<8x676xbf16, #tpu.memory_space<vmem>>, vector<8x676xbf16>
    %c0_1 = arith.constant 0 : index
    %c0_2 = arith.constant 0 : index
    %1 = vector.load %arg3[%c0_1, %c0_2] : memref<676x300xbf16, #tpu.memory_space<vmem>>, vector<676x300xbf16>
    %cst = arith.constant dense<0.000000e+00> : vector<8x300xf32>
    %2 = tpu.matmul %0, %1, %cst {dimension_numbers = #tpu.dot_dimension_numbers<[1], [0], [0], [1], [0, 0, 1, 1], [], []>} : vector<8x676xbf16>, vector<676x300xbf16>, vector<8x300xf32> -> vector<8x300xf32>
    %c0_3 = arith.constant 0 : index
    %c0_4 = arith.constant 0 : index
    %3 = vector.load %arg4[%c0_3, %c0_4] : memref<1x300xf32, #tpu.memory_space<vmem>>, vector<1x300xf32>
    %4 = vector.broadcast %3 : vector<1x300xf32> to vector<8x300xf32>
    %5 = arith.addf %2, %4 : vector<8x300xf32>
    %cst_5 = arith.constant 0.000000e+00 : f32
    %6 = vector.broadcast %cst_5 : f32 to vector<8x300xf32>
    %7 = arith.maximumf %5, %6 : vector<8x300xf32>
    %c0_6 = arith.constant 0 : index
    %c0_7 = arith.constant 0 : index
    %8 = vector.load %arg2[%c0_6, %c0_7] : memref<8x300xf32, #tpu.memory_space<vmem>>, vector<8x300xf32>
    %9 = arith.mulf %7, %8 : vector<8x300xf32>
    %10 = arith.truncf %9 : vector<8x300xf32> to vector<8x300xbf16>
    %c0_8 = arith.constant 0 : index
    %c0_9 = arith.constant 0 : index
    %11 = vector.load %arg5[%c0_8, %c0_9] : memref<300x100xbf16, #tpu.memory_space<vmem>>, vector<300x100xbf16>
    %cst_10 = arith.constant dense<0.000000e+00> : vector<8x100xf32>
    %12 = tpu.matmul %10, %11, %cst_10 {dimension_numbers = #tpu.dot_dimension_numbers<[1], [0], [0], [1], [0, 0, 1, 1], [], []>} : vector<8x300xbf16>, vector<300x100xbf16>, vector<8x100xf32> -> vector<8x100xf32>
    %c0_11 = arith.constant 0 : index
    %c0_12 = arith.constant 0 : index
    %13 = vector.load %arg6[%c0_11, %c0_12] : memref<1x100xf32, #tpu.memory_space<vmem>>, vector<1x100xf32>
    %14 = vector.broadcast %13 : vector<1x100xf32> to vector<8x100xf32>
    %15 = arith.addf %12, %14 : vector<8x100xf32>
    %cst_13 = arith.constant 0.000000e+00 : f32
    %16 = vector.broadcast %cst_13 : f32 to vector<8x100xf32>
    %17 = arith.maximumf %15, %16 : vector<8x100xf32>
    %18 = arith.truncf %17 : vector<8x100xf32> to vector<8x100xbf16>
    %c0_14 = arith.constant 0 : index
    %c0_15 = arith.constant 0 : index
    %19 = vector.load %arg7[%c0_14, %c0_15] : memref<100x128xbf16, #tpu.memory_space<vmem>>, vector<100x128xbf16>
    %cst_16 = arith.constant dense<0.000000e+00> : vector<8x128xf32>
    %20 = tpu.matmul %18, %19, %cst_16 {dimension_numbers = #tpu.dot_dimension_numbers<[1], [0], [0], [1], [0, 0, 1, 1], [], []>} : vector<8x100xbf16>, vector<100x128xbf16>, vector<8x128xf32> -> vector<8x128xf32>
    %c0_17 = arith.constant 0 : index
    %c0_18 = arith.constant 0 : index
    %21 = vector.load %arg8[%c0_17, %c0_18] : memref<1x128xf32, #tpu.memory_space<vmem>>, vector<1x128xf32>
    %22 = vector.broadcast %21 : vector<1x128xf32> to vector<8x128xf32>
    %23 = arith.addf %20, %22 : vector<8x128xf32>
    %cst_19 = arith.constant 0.000000e+00 : f32
    %24 = vector.broadcast %cst_19 : f32 to vector<8x128xf32>
    %25 = arith.maximumf %23, %24 : vector<8x128xf32>
    %c0_20 = arith.constant 0 : index
    %c0_21 = arith.constant 0 : index
    %26 = vector.load %arg9[%c0_20, %c0_21] : memref<8x128xf32, #tpu.memory_space<vmem>>, vector<8x128xf32>
    tpu.vector_store %arg9[%c0_20, %c0_21], %25 {strides = array<i32>} : memref<8x128xf32, #tpu.memory_space<vmem>>, vector<8x128xf32>,
    return
  }
  func.func @transform_0(%arg0: i32) -> (i32, i32) {
    %c0_i32 = arith.constant 0 : i32
    %c0_i32_0 = arith.constant 0 : i32
    return %arg0, %c0_i32 : i32, i32
  }
  func.func @transform_1(%arg0: i32) -> (i32, i32) {
    %c0_i32 = arith.constant 0 : i32
    %c0_i32_0 = arith.constant 0 : i32
    return %arg0, %c0_i32 : i32, i32
  }
  func.func @transform_2(%arg0: i32) -> (i32, i32) {
    %c0_i32 = arith.constant 0 : i32
    %c0_i32_0 = arith.constant 0 : i32
    %c0_i32_1 = arith.constant 0 : i32
    return %c0_i32, %c0_i32_0 : i32, i32
  }
  func.func @transform_3(%arg0: i32) -> (i32, i32) {
    %c0_i32 = arith.constant 0 : i32
    %c0_i32_0 = arith.constant 0 : i32
    %c0_i32_1 = arith.constant 0 : i32
    return %c0_i32, %c0_i32_0 : i32, i32
  }
  func.func @transform_4(%arg0: i32) -> (i32, i32) {
    %c0_i32 = arith.constant 0 : i32
    %c0_i32_0 = arith.constant 0 : i32
    %c0_i32_1 = arith.constant 0 : i32
    return %c0_i32, %c0_i32_0 : i32, i32
  }
  func.func @transform_5(%arg0: i32) -> (i32, i32) {
    %c0_i32 = arith.constant 0 : i32
    %c0_i32_0 = arith.constant 0 : i32
    %c0_i32_1 = arith.constant 0 : i32
    return %c0_i32, %c0_i32_0 : i32, i32
  }
  func.func @transform_6(%arg0: i32) -> (i32, i32) {
    %c0_i32 = arith.constant 0 : i32
    %c0_i32_0 = arith.constant 0 : i32
    %c0_i32_1 = arith.constant 0 : i32
    return %c0_i32, %c0_i32_0 : i32, i32
  }
  func.func @transform_7(%arg0: i32) -> (i32, i32) {
    %c0_i32 = arith.constant 0 : i32
    %c0_i32_0 = arith.constant 0 : i32
    %c0_i32_1 = arith.constant 0 : i32
    return %c0_i32, %c0_i32_0 : i32, i32
  }
  func.func @transform_8(%arg0: i32) -> (i32, i32) {
    %c0_i32 = arith.constant 0 : i32
    %c0_i32_0 = arith.constant 0 : i32
    return %arg0, %c0_i32 : i32, i32
  }
}

</mosaic_0001>

<bundles_post_ra>
// kernel: tpu_custom_call.1
= control target key start
LH: loop header
LB: loop body
LE: loop exit
PB: predicated region body
PF: predicated region fallthrough
CT: control target
= control target key end

     0   :  { %vm921_vm0 = vcmask 293888   ;;  %vm925_vm1 = vcmask 1041408   ;;  %s2672_s0 = inlined_call_operand.vmem [shape: bf16[8,676], index: 0, kind: input, shape index: {}]   ;;  %s2673_s1 = inlined_call_operand.vmem [shape: f32[8,300], index: 1, kind: input, shape index: {}]   ;;  %s2674_s2 = inlined_call_operand.vmem [shape: bf16[676,300], index: 2, kind: input, shape index: {}]   ;;  %s2675_s3 = inlined_call_operand.vmem [shape: f32[1,300], index: 3, kind: input, shape index: {}]   ;;  %s2676_s4 = inlined_call_operand.vmem [shape: bf16[300,100], index: 4, kind: input, shape index: {}]   ;;  %s2677_s5 = inlined_call_operand.vmem [shape: f32[1,100], index: 5, kind: input, shape index: {}]   ;;  %s2678_s6 = inlined_call_operand.vmem [shape: bf16[100,128], index: 6, kind: input, shape index: {}]   ;;  %s2679_s7 = inlined_call_operand.vmem [shape: f32[1,128], index: 7, kind: input, shape index: {}]   ;;  %s2680_s8 = inlined_call_operand.hbm [shape: f32[8,128], index: 8, kind: output, shape index: {}]  }
   0x1   :  { %v1848_v0 = vld [vmem:[%s2674_s2 + $0x4] ss:$12 sps:$4 sm:$0xff]   ;;  %v1850_v1 = vld [vmem:[%s2674_s2] ss:$12 sps:$4 sm:$0xff]   ;;  %v1851_v2 = vld [vmem:[%s2674_s2 + $0x1c] ss:$12 sps:$4 sm:$0xff]  }
   0x2   :  { %935 = vmatprep.subr.bf16.mxu0 %v1848_v0  ;;  %v1853_v3 = vld [vmem:[%s2674_s2 + $0x18] ss:$12 sps:$4 sm:$0xff]   ;;  %v1854_v4 = vld [vmem:[%s2674_s2 + $0x34] ss:$12 sps:$4 sm:$0xff]   ;;  %v1857_v7 = vld [vmem:[%s2674_s2 + $0x30] ss:$12 sps:$4 sm:$0xff]  }
   0x3   :  { %936 = vmatpush1.bf16.msra.mxu0 %v1850_v1  ;;  %v1856_v5 = vld [vmem:[%s2674_s2 + $0xc8] ss:$12 sps:$4 sm:$0xff]   ;;  %v1861_v8 = vld [vmem:[%s2674_s2 + $0xe0] ss:$12 sps:$4 sm:$0xff]   ;;  %v1864_v12 = vld [vmem:[%s2674_s2 + $0x64] ss:$12 sps:$4 sm:$0xff]  }
   0x4   :  { %937 = vmatprep.subr.bf16.mxu0 %v1851_v2  ;;  %v1858_v6 = vld [vmem:[%s2674_s2 + $0x8] ss:$12 sps:$4 sm:$0xff]   ;;  %1728 = vmatprep.subr.bf16.mxu1 %v1856_v5  ;;  %v1859_v9 = vld [vmem:[%s2674_s2 + $0x4c] ss:$12 sps:$4 sm:$0xff]   ;;  %v1871_v16 = vld [vmem:[%s2674_s2 + $0x110] ss:$12 sps:$4 sm:$0xff]  }
   0x5   :  { %1729 = vmatpush3.bf16.msra.mxu1 %v1858_v6  ;;  %v1863_v10 = vld [vmem:[%s2674_s2 + $0x20] ss:$12 sps:$4 sm:$0xff]   ;;  %v1862_v11 = vld [vmem:[%s2674_s2 + $0x48] ss:$12 sps:$4 sm:$0xff]   ;;  %v1866_v13 = vld [vmem:[%s2674_s2 + $0xf8] ss:$12 sps:$4 sm:$0xff]  }
   0x6   :  { %1730 = vmatprep.subr.bf16.mxu1 %v1861_v8  ;;  %v1868_v14 = vld [vmem:[%s2674_s2 + $0x38] ss:$12 sps:$4 sm:$0xff]   ;;  %v1867_v15 = vld [vmem:[%s2674_s2 + $0x60] ss:$12 sps:$4 sm:$0xff]   ;;  %v1873_v17 = vld [vmem:[%s2674_s2 + $0x50] ss:$12 sps:$4 sm:$0xff]  }
   0x7   :  { %938 = vmatpush1.bf16.msra.mxu0 %v1853_v3  ;;  %v1869_v18 = vld [vmem:[%s2674_s2 + $0x7c] ss:$12 sps:$4 sm:$0xff]   ;;  %v1872_v20 = vld [vmem:[%s2674_s2 + $0x78] ss:$12 sps:$4 sm:$0xff]   ;;  %v1874_v22 = vld [vmem:[%s2674_s2 + $0x94] ss:$12 sps:$4 sm:$0xff]  }
   0x8   :  { %939 = vmatprep.subr.bf16.mxu0 %v1854_v4  ;;  %v1876_v19 = vld [vmem:[%s2674_s2 + $0x128] ss:$12 sps:$4 sm:$0xff]   ;;  %v1881_v23 = vld [vmem:[%s2674_s2 + $0x140] ss:$12 sps:$4 sm:$0xff]   ;;  %v1877_v24 = vld [vmem:[%s2674_s2 + $0x90] ss:$12 sps:$4 sm:$0xff]  }
   0x9   :  { %1731 = vmatpush3.bf16.msra.mxu1 %v1863_v10  ;;  %v1878_v21 = vld [vmem:[%s2674_s2 + $0x68] ss:$12 sps:$4 sm:$0xff]   ;;  %v1883_v25 = vld [vmem:[%s2674_s2 + $0x80] ss:$12 sps:$4 sm:$0xff]   ;;  %v1886_v27 = vld [vmem:[%s2674_s2 + $0x158] ss:$12 sps:$4 sm:$0xff]  }
   0xa   :  { %1732 = vmatprep.subr.bf16.mxu1 %v1866_v13  ;;  %v1879_v26 = vld [vmem:[%s2674_s2 + $0xac] ss:$12 sps:$4 sm:$0xff]   ;;  %v1882_v28 = vld [vmem:[%s2674_s2 + $0xa8] ss:$12 sps:$4 sm:$0xff]   ;;  %v1884_v29 = vld [vmem:[%s2674_s2 + $0xc4] ss:$12 sps:$4 sm:$0xff]  }
   0xb   :  { %940 = vmatpush1.bf16.msra.mxu0 %v1857_v7  ;;  %v1888_v30 = vld [vmem:[%s2674_s2 + $0x98] ss:$12 sps:$4 sm:$0xff]   ;;  %v1891_v31 = vld [vmem:[%s2674_s2 + $0x170] ss:$12 sps:$4 sm:$0xff]   ;;  %v1887_v32 = vld [vmem:[%s2674_s2 + $0xc0] ss:$12 sps:$4 sm:$0xff]  }
   0xc   :  { %941 = vmatprep.subr.bf16.mxu0 %v1859_v9  ;;  %v31_v33 = vld [vmem:[%s2672_s0] sm:$0xff]  ;;  %v1889_v34 = vld [vmem:[%s2674_s2 + $0xdc] ss:$12 sps:$4 sm:$0xff]   ;;  %v1901_v44 = vld [vmem:[%s2674_s2 + $0x10c] ss:$12 sps:$4 sm:$0xff]  }
   0xd   :  { %1733 = vmatpush3.bf16.msra.mxu1 %v1868_v14  ;;  %v1893_v35 = vld [vmem:[%s2674_s2 + $0xb0] ss:$12 sps:$4 sm:$0xff]   ;;  %v1561_v36 = vcombine.high %v31_v33, %v31_v33  ;;  %v1898_v37 = vld [vmem:[%s2674_s2 + $0x248] ss:$12 sps:$4 sm:$0xff]   ;;  %v1892_v38 = vld [vmem:[%s2674_s2 + $0xd8] ss:$12 sps:$4 sm:$0xff]   ;;  %v2241_v40 = vcombine.low %v31_v33, %v31_v33 }
   0xe   :  { %1734 = vmatprep.subr.bf16.mxu1 %v1871_v16  ;;  %v1894_v39 = vld [vmem:[%s2674_s2 + $0xf4] ss:$12 sps:$4 sm:$0xff]   ;;  %v1899_v43 = vld [vmem:[%s2674_s2 + $0xf0] ss:$12 sps:$4 sm:$0xff]   ;;  %v1908_v46 = vld [vmem:[%s2674_s2 + $0x278] ss:$12 sps:$4 sm:$0xff]  }
   0xf   :  { %942 = vmatpush1.bf16.msra.mxu0 %v1862_v11  ;;  %1090 = vmatprep.mubr.bf16.mxu1 %v1561_v36  ;;  %v1900_v41 = vld [vmem:[%s2674_s2 + $0x188] ss:$12 sps:$4 sm:$0xff]   ;;  %v1903_v42 = vld [vmem:[%s2674_s2 + $0x260] ss:$12 sps:$4 sm:$0xff]   ;;  %v1906_v48 = vld [vmem:[%s2674_s2 + $0x124] ss:$12 sps:$4 sm:$0xff]  }
  0x10   :  { %943 = vmatprep.subr.bf16.mxu0 %v1864_v12  ;;  %967 = vmatprep.mubr.bf16.mxu0 %v1561_v36  ;;  %v1905_v45 = vld [vmem:[%s2674_s2 + $0x1a0] ss:$12 sps:$4 sm:$0xff]   ;;  %v1904_v47 = vld [vmem:[%s2674_s2 + $0x108] ss:$12 sps:$4 sm:$0xff]   ;;  %v1910_v49 = vld [vmem:[%s2674_s2 + $0x1b8] ss:$12 sps:$4 sm:$0xff]  }
  0x11   :  { %1735 = vmatpush3.bf16.msra.mxu1 %v1873_v17  ;;  %v1913_v50 = vld [vmem:[%s2674_s2 + $0x290] ss:$12 sps:$4 sm:$0xff]   ;;  %v1909_v51 = vld [vmem:[%s2674_s2 + $0x120] ss:$12 sps:$4 sm:$0xff]   ;;  %v1918_v54 = vld [vmem:[%s2674_s2 + $0x2a8] ss:$12 sps:$4 sm:$0xff]  }
  0x12   :  { %1736 = vmatprep.subr.bf16.mxu1 %v1876_v19  ;;  %v1915_v52 = vld [vmem:[%s2674_s2 + $0x1d0] ss:$12 sps:$4 sm:$0xff]   ;;  %v1914_v55 = vld [vmem:[%s2674_s2 + $0x138] ss:$12 sps:$4 sm:$0xff]   ;;  %v1916_v56 = vld [vmem:[%s2674_s2 + $0x154] ss:$12 sps:$4 sm:$0xff]  }
  0x13   :  { %944 = vmatpush1.bf16.msra.mxu0 %v1867_v15  ;;  %v1911_v53 = vld [vmem:[%s2674_s2 + $0x13c] ss:$12 sps:$4 sm:$0xff]   ;;  %v1923_v58 = vld [vmem:[%s2674_s2 + $0x2c0] ss:$12 sps:$4 sm:$0xff]   ;;  %v1929_v62 = vld [vmem:[%s2674_s2 + $0x2d8] ss:$12 sps:$4 sm:$0xff]  }
  0x14   :  { %945 = vmatprep.subr.bf16.mxu0 %v1869_v18  ;;  %v1920_v57 = vld [vmem:[%s2674_s2 + $0x1e8] ss:$12 sps:$4 sm:$0xff]   ;;  %v1919_v59 = vld [vmem:[%s2674_s2 + $0x150] ss:$12 sps:$4 sm:$0xff]   ;;  %v1921_v60 = vld [vmem:[%s2674_s2 + $0x16c] ss:$12 sps:$4 sm:$0xff]  }
  0x15   :  { %1737 = vmatpush3.bf16.msra.mxu1 %v1878_v21  ;;  %v1925_v61 = vld [vmem:[%s2674_s2 + $0x200] ss:$12 sps:$4 sm:$0xff]   ;;  %v1924_v63 = vld [vmem:[%s2674_s2 + $0x168] ss:$12 sps:$4 sm:$0xff]   ;;  %v1928_v1 = vld [vmem:[%s2674_s2 + $0x184] ss:$12 sps:$4 sm:$0xff]  }
  0x16   :  { %1738 = vmatprep.subr.bf16.mxu1 %v1881_v23  ;;  %v32_v0 = vld [vmem:[%s2672_s0 + $0x8] sm:$0xff]  ;;  %v1930_v3 = vld [vmem:[%s2674_s2 + $0x218] ss:$12 sps:$4 sm:$0xff]   ;;  %v1934_v4 = vld [vmem:[%s2674_s2 + $0x2f0] ss:$12 sps:$4 sm:$0xff]   ;;  %v2075_v12 = vmov 0  }
  0x17   :  { %946 = vmatpush1.bf16.msra.mxu0 %v1872_v20  ;;  %v1563_v2 = vcombine.high %v32_v0, %v32_v0  ;;  %v1926_v5 = vld [vmem:[%s2674_s2 + $0x180] ss:$12 sps:$4 sm:$0xff]   ;;  %v1935_v6 = vld [vmem:[%s2674_s2 + $0x230] ss:$12 sps:$4 sm:$0xff]   ;;  %v1931_v8 = vld [vmem:[%s2674_s2 + $0x198] ss:$12 sps:$4 sm:$0xff]   ;;  %v2338_v9 = vcombine.low %v32_v0, %v32_v0 }
  0x18   :  { %947 = vmatprep.subr.bf16.mxu0 %v1874_v22  ;;  %v1933_v7 = vld [vmem:[%s2674_s2 + $0x19c] ss:$12 sps:$4 sm:$0xff]   ;;  %v1938_v11 = vld [vmem:[%s2674_s2 + $0x1b4] ss:$12 sps:$4 sm:$0xff]   ;;  %v1944_v15 = vld [vmem:[%s2674_s2 + $0x1cc] ss:$12 sps:$4 sm:$0xff]  }
  0x19   :  { %1739 = vmatpush3.bf16.msra.mxu1 %v1883_v25  ;;  %v1941_v10 = vld [vmem:[%s2674_s2 + $0x308] ss:$12 sps:$4 sm:$0xff]   ;;  %v1936_v13 = vld [vmem:[%s2674_s2 + $0x1b0] ss:$12 sps:$4 sm:$0xff]   ;;  %v1945_v14 = vld [vmem:[%s2674_s2 + $0x320] ss:$12 sps:$4 sm:$0xff]  }
  0x1a   :  { %1740 = vmatprep.subr.bf16.mxu1 %v1886_v27  ;;  %v1942_v16 = vld [vmem:[%s2674_s2 + $0x1c8] ss:$12 sps:$4 sm:$0xff]   ;;  %v1949_v17 = vld [vmem:[%s2674_s2 + $0x338] ss:$12 sps:$4 sm:$0xff]   ;;  %v1946_v19 = vld [vmem:[%s2674_s2 + $0x1e0] ss:$12 sps:$4 sm:$0xff]  }
  0x1b   :  { %948 = vmatpush1.bf16.msra.mxu0 %v1877_v24  ;;  %v1948_v18 = vld [vmem:[%s2674_s2 + $0x1e4] ss:$12 sps:$4 sm:$0xff]   ;;  %v1952_v21 = vld [vmem:[%s2674_s2 + $0x1fc] ss:$12 sps:$4 sm:$0xff]   ;;  %v1962_v33 = vld [vmem:[%s2674_s2 + $0x240] ss:$12 sps:$4 sm:$0xff]  }
  0x1c   :  { %949 = vmatprep.subr.bf16.mxu0 %v1879_v26  ;;  %v1953_v20 = vld [vmem:[%s2674_s2 + $0x350] ss:$12 sps:$4 sm:$0xff]   ;;  %v1950_v24 = vld [vmem:[%s2674_s2 + $0x1f8] ss:$12 sps:$4 sm:$0xff]   ;;  %v1957_v25 = vld [vmem:[%s2674_s2 + $0x368] ss:$12 sps:$4 sm:$0xff]  }
  0x1d   :  { %1741 = vmatpush3.bf16.msra.mxu1 %v1888_v30  ;;  %v33_v22 = vld [vmem:[%s2672_s0 + $0x10] sm:$0xff]  ;;  %v1981_v36 = vld [vmem:[%s2674_s2 + $0x3f8] ss:$0 sps:$4 sm:$0x33]  }
  0x1e   :  { %1742 = vmatprep.subr.bf16.mxu1 %v1891_v31  ;;  %v2381_v23 = vcombine.high %v33_v22, %v33_v22  ;;  %v1956_v26 = vld [vmem:[%s2674_s2 + $0x214] ss:$12 sps:$4 sm:$0xff]   ;;  %v1954_v27 = vld [vmem:[%s2674_s2 + $0x210] ss:$12 sps:$4 sm:$0xff]   ;;  %v1965_v31 = vld [vmem:[%s2674_s2 + $0x398] ss:$12 sps:$4 sm:$0xff]  }
  0x1f   :  { %950 = vmatpush1.bf16.msra.mxu0 %v1882_v28  ;;  %v1961_v28 = vld [vmem:[%s2674_s2 + $0x380] ss:$12 sps:$4 sm:$0xff]   ;;  %v1958_v30 = vld [vmem:[%s2674_s2 + $0x228] ss:$12 sps:$4 sm:$0xff]  }
  0x20   :  { %951 = vmatprep.subr.bf16.mxu0 %v1884_v29  ;;  %v1960_v29 = vld [vmem:[%s2674_s2 + $0x22c] ss:$12 sps:$4 sm:$0xff]  }
  0x21   :  { %1743 = vmatpush3.bf16.msra.mxu1 %v1893_v35  ;;  %v1968_v35 = vld [vmem:[%s2674_s2 + $0x25c] ss:$12 sps:$4 sm:$0xff]  }
  0x22   :  { %1750 = vmatprep.subr.bf16.mxu1 %v1898_v37  ;;  %v1966_v37 = vld [vmem:[%s2674_s2 + $0x258] ss:$12 sps:$4 sm:$0xff]  }
  0x23   :  { %952 = vmatpush1.bf16.msra.mxu0 %v1887_v32  ;;  %v1964_v32 = vld [vmem:[%s2674_s2 + $0x244] ss:$12 sps:$4 sm:$0xff]  }
  0x24   :  { %953 = vmatprep.subr.bf16.mxu0 %v1889_v34  ;;  %1091 = vmatmul.mubr.bf16.vlgmr.msra.gmra.mrb[0].mxu1 %v2241_v40  ;;  %v1969_v34 = vld [vmem:[%s2674_s2 + $0x3b0] ss:$12 sps:$4 sm:$0xff]  }
  0x25   :  { %1751 = vmatpush3.bf16.msra.mxu1 %v1900_v41  ;;  %1130 = vmatprep.mubr.bf16.mxu1 %v1563_v2  ;;  %v1977_v41 = vld [vmem:[%s2674_s2 + $0x3e0] ss:$12 sps:$4 sm:$0xff]  }
  0x26   :  { %1752 = vmatprep.subr.bf16.mxu1 %v1903_v42  ;;  %v1976_v42 = vld [vmem:[%s2674_s2 + $0x28c] ss:$12 sps:$4 sm:$0xff]  }
  0x27   :  { %954 = vmatpush1.bf16.msra.mxu0 %v1892_v38  ;;  %v1972_v38 = vld [vmem:[%s2674_s2 + $0x274] ss:$12 sps:$4 sm:$0xff]  }
  0x28   :  { %955 = vmatprep.subr.bf16.mxu0 %v1894_v39  ;;  %v1973_v39 = vld [vmem:[%s2674_s2 + $0x3c8] ss:$12 sps:$4 sm:$0xff]  }
  0x29   :  { %1753 = vmatpush3.bf16.msra.mxu1 %v1905_v45  ;;  %v1980_v45 = vld [vmem:[%s2674_s2 + $0x2a4] ss:$12 sps:$4 sm:$0xff]  }
  0x2a   :  { %1754 = vmatprep.subr.bf16.mxu1 %v1908_v46  ;;  %v1978_v46 = vld [vmem:[%s2674_s2 + $0x2a0] ss:$12 sps:$4 sm:$0xff]  }
  0x2b   :  { %956 = vmatpush1.bf16.msra.mxu0 %v1899_v43  ;;  %v933_v43 = vsel %vm925_vm1, %v1981_v36, 0 }
  0x2c   :  { %957 = vmatprep.subr.bf16.mxu0 %v1901_v44  ;;  %v1974_v44 = vld [vmem:[%s2674_s2 + $0x288] ss:$12 sps:$4 sm:$0xff]  }
  0x2d   :  { %1755 = vmatpush3.bf16.msra.mxu1 %v1910_v49  ;;  %v1983_v49 = vld [vmem:[%s2674_s2 + $0x2b8] ss:$12 sps:$4 sm:$0xff]  }
  0x2e   :  { %1756 = vmatprep.subr.bf16.mxu1 %v1913_v50  ;;  %v1989_v50 = vld [vmem:[%s2674_s2 + $0x2d4] ss:$12 sps:$4 sm:$0xff]  }
  0x2f   :  { %958 = vmatpush1.bf16.msra.mxu0 %v1904_v47  ;;  %v1985_v47 = vld [vmem:[%s2674_s2 + $0x2bc] ss:$12 sps:$4 sm:$0xff]  }
  0x30   :  { %959 = vmatprep.subr.bf16.mxu0 %v1906_v48  ;;  %v2462_v48 = vcombine.low %v33_v22, %v33_v22 }
  0x31   :  { %1757 = vmatpush3.bf16.msra.mxu1 %v1915_v52 }
  0x32   :  { %1758 = vmatprep.subr.bf16.mxu1 %v1918_v54 }
  0x33   :  { %960 = vmatpush1.bf16.msra.mxu0 %v1909_v51 }
  0x34   :  { %961 = vmatprep.subr.bf16.mxu0 %v1911_v53 }
  0x35   :  { %1759 = vmatpush3.bf16.msra.mxu1 %v1920_v57 }
  0x36   :  { %1760 = vmatprep.subr.bf16.mxu1 %v1923_v58 }
  0x37   :  { %962 = vmatpush1.bf16.msra.mxu0 %v1914_v55 }
  0x38   :  { %963 = vmatprep.subr.bf16.mxu0 %v1916_v56 }
  0x39   :  { %1761 = vmatpush3.bf16.msra.mxu1 %v1925_v61 }
  0x3a   :  { %1762 = vmatprep.subr.bf16.mxu1 %v1929_v62 }
  0x3b   :  { %964 = vmatpush1.bf16.msra.mxu0 %v1919_v59 }
  0x3c   :  { %965 = vmatprep.subr.bf16.mxu0 %v1921_v60 }
  0x3d   :  { %1763 = vmatpush3.bf16.msra.mxu1 %v1930_v3 }
  0x3e   :  { %1764 = vmatprep.subr.bf16.mxu1 %v1934_v4 }
  0x3f   :  { %966 = vmatpush1.bf16.msra.mxu0 %v1924_v63 }
  0x40   :  { %976 = vmatprep.subr.bf16.mxu0 %v1928_v1 }
  0x41   :  { %1765 = vmatpush3.bf16.msra.mxu1 %v1935_v6 }
  0x42   :  { %968 = vmatmul.mubr.bf16.vlgmr.msra.gmra.mrb[0].mxu0 %v2241_v40  ;;  %1138 = vmatprep.subr.bf16.mxu1 %v2075_v12  ;;  %v1970_v40 = vld [vmem:[%s2674_s2 + $0x270] ss:$12 sps:$4 sm:$0xff]  }
  0x43   :  { %977 = vmatpush1.bf16.msra.mxu0 %v1926_v5  ;;  %1008 = vmatprep.mubr.bf16.mxu0 %v1563_v2 }
  0x44   :  { %978 = vmatprep.subr.bf16.mxu0 %v1933_v7  ;;  %1131 = vmatmul.mubr.bf16.vlgmr.msra.gmra.mrb[4].mxu1 %v2338_v9 }
  0x45   :  { %1139 = vmatpush1.bf16.msra.mxu1 %v1941_v10  ;;  %1697 = vmatprep.mubr.msk.bf16.mxu1 %vm921_vm0, %v2381_v23 }
  0x46   :  { %1140 = vmatprep.subr.bf16.mxu1 %v2075_v12 }
  0x47   :  { %979 = vmatpush1.bf16.msra.mxu0 %v1931_v8 }
  0x48   :  { %980 = vmatprep.subr.bf16.mxu0 %v1938_v11 }
  0x49   :  { %1141 = vmatpush1.bf16.msra.mxu1 %v1945_v14 }
  0x4a   :  { %1142 = vmatprep.subr.bf16.mxu1 %v2075_v12 }
  0x4b   :  { %981 = vmatpush1.bf16.msra.mxu0 %v1936_v13 }
  0x4c   :  { %982 = vmatprep.subr.bf16.mxu0 %v1944_v15 }
  0x4d   :  { %1143 = vmatpush1.bf16.msra.mxu1 %v1949_v17 }
  0x4e   :  { %1144 = vmatprep.subr.bf16.mxu1 %v2075_v12 }
  0x4f   :  { %983 = vmatpush1.bf16.msra.mxu0 %v1942_v16 }
  0x50   :  { %984 = vmatprep.subr.bf16.mxu0 %v1948_v18 }
  0x51   :  { %1145 = vmatpush1.bf16.msra.mxu1 %v1953_v20 }
  0x52   :  { %1146 = vmatprep.subr.bf16.mxu1 %v2075_v12 }
  0x53   :  { %985 = vmatpush1.bf16.msra.mxu0 %v1946_v19 }
  0x54   :  { %986 = vmatprep.subr.bf16.mxu0 %v1952_v21 }
  0x55   :  { %1147 = vmatpush1.bf16.msra.mxu1 %v1957_v25 }
  0x56   :  { %1148 = vmatprep.subr.bf16.mxu1 %v2075_v12 }
  0x57   :  { %987 = vmatpush1.bf16.msra.mxu0 %v1950_v24 }
  0x58   :  { %988 = vmatprep.subr.bf16.mxu0 %v1956_v26 }
  0x59   :  { %1149 = vmatpush1.bf16.msra.mxu1 %v1961_v28 }
  0x5a   :  { %1150 = vmatprep.subr.bf16.mxu1 %v2075_v12 }
  0x5b   :  { %989 = vmatpush1.bf16.msra.mxu0 %v1954_v27 }
  0x5c   :  { %990 = vmatprep.subr.bf16.mxu0 %v1960_v29 }
  0x5d   :  { %1151 = vmatpush1.bf16.msra.mxu1 %v1965_v31 }
  0x5e   :  { %1152 = vmatprep.subr.bf16.mxu1 %v2075_v12 }
  0x5f   :  { %991 = vmatpush1.bf16.msra.mxu0 %v1958_v30 }
  0x60   :  { %992 = vmatprep.subr.bf16.mxu0 %v1964_v32 }
  0x61   :  { %1153 = vmatpush1.bf16.msra.mxu1 %v1969_v34 }
  0x62   :  { %1154 = vmatprep.subr.bf16.mxu1 %v2075_v12 }
  0x63   :  { %993 = vmatpush1.bf16.msra.mxu0 %v1962_v33 }
  0x64   :  { %994 = vmatprep.subr.bf16.mxu0 %v1968_v35 }
  0x65   :  { %1155 = vmatpush1.bf16.msra.mxu1 %v1973_v39 }
  0x66   :  { %1156 = vmatprep.subr.bf16.mxu1 %v2075_v12 }
  0x67   :  { %995 = vmatpush1.bf16.msra.mxu0 %v1966_v37 }
  0x68   :  { %996 = vmatprep.subr.bf16.mxu0 %v1972_v38 }
  0x69   :  { %1157 = vmatpush1.bf16.msra.mxu1 %v1977_v41 }
  0x6a   :  { %1158 = vmatprep.subr.bf16.mxu1 %v2075_v12 }
  0x6b   :  { %997 = vmatpush1.bf16.msra.mxu0 %v1970_v40 }
  0x6c   :  { %998 = vmatprep.subr.bf16.mxu0 %v1976_v42 }
  0x6d   :  { %1159 = vmatpush1.bf16.msra.mxu1 %v933_v43 }
  0x6f   :  { %999 = vmatpush1.bf16.msra.mxu0 %v1974_v44 }
  0x70   :  { %1000 = vmatprep.subr.bf16.mxu0 %v1980_v45  ;;  %1171 = vmatmul.mubr.bf16.vlgmr.msra.gmra.mrb[8].mxu1 %v2462_v48 }
  0x73   :  { %1001 = vmatpush1.bf16.msra.mxu0 %v1978_v46 }
  0x74   :  { %1002 = vmatprep.subr.bf16.mxu0 %v1985_v47 }
  0x75   :  { %13 = vsyncpa [#allocation3], 0  ;;  %v1987_v51 = vld [vmem:[%s2674_s2 + $0x2d0] ss:$12 sps:$4 sm:$0xff]   ;;  %v1992_v52 = vld [vmem:[%s2674_s2 + $0x2ec] ss:$12 sps:$4 sm:$0xff]   ;;  %v206_v35 = vlaneseq }
  0x76   :  { %v1990_v53 = vld [vmem:[%s2674_s2 + $0x2e8] ss:$12 sps:$4 sm:$0xff]   ;;  %v1995_v54 = vld [vmem:[%s2674_s2 + $0x304] ss:$12 sps:$4 sm:$0xff]   ;;  %v1993_v55 = vld [vmem:[%s2674_s2 + $0x300] ss:$12 sps:$4 sm:$0xff]  }
  0x77   :  { %1003 = vmatpush1.bf16.msra.mxu0 %v1983_v49  ;;  %v1998_v56 = vld [vmem:[%s2674_s2 + $0x31c] ss:$12 sps:$4 sm:$0xff]   ;;  %v1996_v57 = vld [vmem:[%s2674_s2 + $0x318] ss:$12 sps:$4 sm:$0xff]   ;;  %v2001_v58 = vld [vmem:[%s2674_s2 + $0x334] ss:$12 sps:$4 sm:$0xff]  }
  0x78   :  { %1004 = vmatprep.subr.bf16.mxu0 %v1989_v50  ;;  %v1999_v59 = vld [vmem:[%s2674_s2 + $0x330] ss:$12 sps:$4 sm:$0xff]   ;;  %v2004_v60 = vld [vmem:[%s2674_s2 + $0x34c] ss:$12 sps:$4 sm:$0xff]   ;;  %v2002_v61 = vld [vmem:[%s2674_s2 + $0x348] ss:$12 sps:$4 sm:$0xff]  }
  0x79   :  { %v2007_v62 = vld [vmem:[%s2674_s2 + $0x364] ss:$12 sps:$4 sm:$0xff]   ;;  %v2005_v63 = vld [vmem:[%s2674_s2 + $0x360] ss:$12 sps:$4 sm:$0xff]   ;;  %v2010_v0 = vld [vmem:[%s2674_s2 + $0x37c] ss:$12 sps:$4 sm:$0xff]  }
  0x7a   :  { %v2008_v1 = vld [vmem:[%s2674_s2 + $0x378] ss:$12 sps:$4 sm:$0xff]   ;;  %v2013_v2 = vld [vmem:[%s2674_s2 + $0x394] ss:$12 sps:$4 sm:$0xff]   ;;  %v2011_v3 = vld [vmem:[%s2674_s2 + $0x390] ss:$12 sps:$4 sm:$0xff]  }
  0x7b   :  { %1005 = vmatpush1.bf16.msra.mxu0 %v1987_v51  ;;  %v2016_v4 = vld [vmem:[%s2674_s2 + $0x3ac] ss:$12 sps:$4 sm:$0xff]   ;;  %v2014_v5 = vld [vmem:[%s2674_s2 + $0x3a8] ss:$12 sps:$4 sm:$0xff]   ;;  %v2019_v6 = vld [vmem:[%s2674_s2 + $0x3c4] ss:$12 sps:$4 sm:$0xff]  }
  0x7c   :  { %1006 = vmatprep.subr.bf16.mxu0 %v1992_v52  ;;  %v2017_v7 = vld [vmem:[%s2674_s2 + $0x3c0] ss:$12 sps:$4 sm:$0xff]   ;;  %v2022_v8 = vld [vmem:[%s2674_s2 + $0x3dc] ss:$12 sps:$4 sm:$0xff]   ;;  %v2020_v10 = vld [vmem:[%s2674_s2 + $0x3d8] ss:$12 sps:$4 sm:$0xff]  }
  0x7d   :  { %v2025_v14 = vld [vmem:[%s2676_s4 + $0x40] sm:$0xff]   ;;  %v2027_v16 = vld [vmem:[%s2676_s4 + $0x48] sm:$0xff]   ;;  %v2029_v18 = vld [vmem:[%s2676_s4 + $0x50] sm:$0xff]   ;;  %v2076_v36 = vmov 0.0   ;;  %v207_v37 = vshrl.u32 %v206_v35, 7  ;;  %vm2077_vm2 = vmmov 0  }
  0x7e   :  { %v2026_v15 = vld [vmem:[%s2676_s4] sm:$0xff]   ;;  %1772 = vmatprep.subr.bf16.mxu1 %v2025_v14  ;;  %v2028_v17 = vld [vmem:[%s2676_s4 + $0x8] sm:$0xff]   ;;  %v2030_v19 = vld [vmem:[%s2676_s4 + $0x10] sm:$0xff]   ;;  %vm1352_vm3 = vcmask 1045504   ;;  %vm1348_vm4 = vcmask 359424   ;;  %vm1497_vm5 = vcmask 818176  }
  0x7f   :  { %1007 = vmatpush1.bf16.msra.mxu0 %v1990_v53  ;;  %1773 = vmatpush3.bf16.msra.mxu1 %v2026_v15  ;;  %v2031_v20 = vld [vmem:[%s2676_s4 + $0x58] sm:$0xff]   ;;  %v2033_v22 = vld [vmem:[%s2676_s4 + $0x60] sm:$0xff]   ;;  %v2035_v24 = vld [vmem:[%s2676_s4 + $0x68] sm:$0xff]   ;;  %v216_v38 = vsub.s32 2, %v207_v37  ;;  %v208_v53 = vsub.s32 0, %v207_v37  ;;  %s2078_s30 = smov [#allocation2]  }
  0x80   :  { %1017 = vmatprep.subr.bf16.mxu0 %v1995_v54  ;;  %1774 = vmatprep.subr.bf16.mxu1 %v2027_v16  ;;  %v2032_v21 = vld [vmem:[%s2676_s4 + $0x18] sm:$0xff]   ;;  %v2036_v25 = vld [vmem:[%s2676_s4 + $0x28] sm:$0xff]   ;;  %v2037_v31 = vld [vmem:[%s2676_s4 + $0x70] sm:$0xff]   ;;  %v212_v54 = vsub.s32 1, %v207_v37  ;;  %s1552_s9 = sshll.u32 %s2078_s30, 4  ;;  %s1553_s9 = int_to_ptr.vmem [resolvable:$true] %s1552_s9 }
  0x81   :  { %v2038_v32 = vld [vmem:[%s2676_s4 + $0x30] sm:$0xff]   ;;  %v2039_v33 = vld [vmem:[%s2676_s4 + $0x78] sm:$0xff]   ;;  %v204_v39 = vld [vmem:[%s2675_s3] sm:$0x7]  ;;  %p2056_p1 = scmp.lt.s32.totalorder %s1553_s9, %s1553_s9 }
  0x82   :  { %1009 = vmatmul.mubr.bf16.vlgmr.msra.gmra.mrb[0].mxu0 %v2338_v9  ;;  %v202_v9 = vld [vmem:[%s2674_s2 + $0x3f0] sm:$0x33]  ;;  %v2040_v34 = vld [vmem:[%s2676_s4 + $0x38] sm:$0xff]   ;;  %v217_v40 = vrot.slane %v204_v39, %v216_v38  ;;  %v2044_v14 = vld [vmem:[%s2678_s6] sm:$0xff]  }
  0x83   :  { %1018 = vmatpush1.bf16.msra.mxu0 %v1993_v55  ;;  %1696 = vmatprep.mubr.msk.bf16.mxu0 %vm921_vm0, %v2381_v23  ;;  %v1693_v11 = vcombine.high %v202_v9, %v202_v9  ;;  %v1692_v12 = vcombine.low %v202_v9, %v202_v9  ;;  %v2034_v23 = vld [vmem:[%s2676_s4 + $0x20] sm:$0xff]   ;;  %v209_v55 = vrot.slane %v204_v39, %v208_v53  ;;  %v2045_v16 = vld [vmem:[%s2678_s6 + $0x8] sm:$0xff]  }
  0x84   :  { %1019 = vmatprep.subr.bf16.mxu0 %v1998_v56  ;;  %1775 = vmatpush3.bf16.msra.mxu1 %v2028_v17  ;;  %v213_v56 = vrot.slane %v204_v39, %v212_v54  ;;  %v2046_v17 = vld [vmem:[%s2678_s6 + $0x10] sm:$0xff]   ;;  %v1719_v37 = vld [vmem:[%s2679_s7] ss:$0 sm:$0xff] }
  0x85   :  { %v927_v13 = vsel %vm925_vm1, %v1692_v12, 0  ;;  %1776 = vmatprep.subr.bf16.mxu1 %v2029_v18  ;;  %v2047_v18 = vld [vmem:[%s2678_s6 + $0x18] sm:$0xff]  }
  0x87   :  { %1020 = vmatpush1.bf16.msra.mxu0 %v1996_v57 }
  0x88   :  { %1021 = vmatprep.subr.bf16.mxu0 %v2001_v58  ;;  %1777 = vmatpush3.bf16.msra.mxu1 %v2030_v19  ;;  %v2048_v19 = vld [vmem:[%s2678_s6 + $0x20] sm:$0xff]  }
  0x89   :  { %1778 = vmatprep.subr.bf16.mxu1 %v2031_v20  ;;  %v2049_v20 = vld [vmem:[%s2678_s6 + $0x28] sm:$0xff]  }
  0x8b   :  { %1022 = vmatpush1.bf16.msra.mxu0 %v1999_v59 }
  0x8c   :  { %1023 = vmatprep.subr.bf16.mxu0 %v2004_v60  ;;  %1779 = vmatpush3.bf16.msra.mxu1 %v2032_v21  ;;  %v1181_v60 = vld [vmem:[%s2673_s1] sm:$0xff]  ;;  %v2050_v21 = vld [vmem:[%s2678_s6 + $0x30] ss:$0 sps:$4 sm:$0x33]  }
  0x8d   :  { %1780 = vmatprep.subr.bf16.mxu1 %v2033_v22  ;;  %v1502_v22 = vsel %vm925_vm1, %v2050_v21, 0 }
  0x8f   :  { %1024 = vmatpush1.bf16.msra.mxu0 %v2002_v61 }
  0x90   :  { %1025 = vmatprep.subr.bf16.mxu0 %v2007_v62  ;;  %1781 = vmatpush3.bf16.msra.mxu1 %v2034_v23 }
  0x91   :  { %1782 = vmatprep.subr.bf16.mxu1 %v2035_v24 }
  0x93   :  { %1026 = vmatpush1.bf16.msra.mxu0 %v2005_v63 }
  0x94   :  { %1027 = vmatprep.subr.bf16.mxu0 %v2010_v0  ;;  %1783 = vmatpush3.bf16.msra.mxu1 %v2036_v25  ;;  %v1182_v0 = vld [vmem:[%s2673_s1 + $0x8] sm:$0xff] }
  0x95   :  { %1784 = vmatprep.subr.bf16.mxu1 %v2037_v31 }
  0x97   :  { %1028 = vmatpush1.bf16.msra.mxu0 %v2008_v1 }
  0x98   :  { %1029 = vmatprep.subr.bf16.mxu0 %v2013_v2  ;;  %1785 = vmatpush3.bf16.msra.mxu1 %v2038_v32 }
  0x99   :  { %1786 = vmatprep.subr.bf16.mxu1 %v2039_v33 }
  0x9b   :  { %1030 = vmatpush1.bf16.msra.mxu0 %v2011_v3 }
  0x9c   :  { %1031 = vmatprep.subr.bf16.mxu0 %v2016_v4  ;;  %1787 = vmatpush3.bf16.msra.mxu1 %v2040_v34 }
  0x9d   :  { %1806 = vmatprep.subr.bf16.mxu1 %v2076_v36 }
  0x9f   :  { %1032 = vmatpush1.bf16.msra.mxu0 %v2014_v5 }
  0xa0   :  { %1033 = vmatprep.subr.bf16.mxu0 %v2019_v6  ;;  %v2041_v6 = vld [vmem:[%s2676_s4 + $0x80] sm:$0xff]  }
  0xa3   :  { %1034 = vmatpush1.bf16.msra.mxu0 %v2017_v7 }
  0xa4   :  { %1035 = vmatprep.subr.bf16.mxu0 %v2022_v8  ;;  %v2042_v8 = vld [vmem:[%s2676_s4 + $0x88] sm:$0xff]  }
  0xa7   :  { %1036 = vmatpush1.bf16.msra.mxu0 %v2020_v10  ;;  %v2043_v10 = vld [vmem:[%s2676_s4 + $0x90] sm:$0x3f]  }
  0xa8   :  { %1695 = vmatprep.subr.msk.bf16.mxu0 %vm925_vm1, %v1693_v11  ;;  %v1183_v11 = vld [vmem:[%s2673_s1 + $0x10] sm:$0xff] }
  0xab   :  { %1038 = vmatpush1.bf16.msra.mxu0 %v927_v13  ;;  %v1354_v13 = vsel %vm1352_vm3, %v2043_v10, 0 }
  0xae   :  { %1050 = vmatmul.mubr.bf16.vlgmr.msra.gmra.mrb[0].mxu0 %v2462_v48 }
  0xf7   :  { %v1744_v26 = vpop.f32.mrb[0].mxu1 }
  0xf8   :  { %v1745_v27 = vpop.f32.mrb[1].mxu1 }
  0xf9   :  { %v1746_v28 = vadd.f32 %v1745_v27, %v1744_v26  ;;  %v1747_v29 = vpop.f32.mrb[2].mxu1 }
  0xfa   :  { %v1748_v30 = vpop.f32.mrb[3].mxu1 }
  0xfb   :  { %v1093_v41 = vadd.f32 %v1746_v28, %v217_v40  ;;  %v1698_v28 = vld [vmem:[%s2677_s5] ss:$0 sm:$0xff]  ;;  %s2051_s5 = scalar_lea.vmem %s1553_s9, 128 }
  0xfc   :  { %p2052_p0 = scmp.ne.s32.totalorder %s1553_s9, %s2051_s5  ;;  %p2057_p2 = scmp.lt.s32.totalorder %s2051_s5, %s2051_s5 }
  0xfe   :  { %p2058_p3 = por %p2057_p2, %p2056_p1 }
 0x100   :  { %p2059_p4 = pnand %p2058_p3, %p2052_p0 }
 0x117   :  { %v1766_v42 = vpop.f32.mrb[4].mxu1 }
 0x118   :  { %v1767_v43 = vpop.f32.mrb[5].mxu1 }
 0x119   :  { %v1768_v44 = vadd.f32 %v1767_v43, %v1766_v42  ;;  %v1769_v45 = vpop.f32.mrb[6].mxu1 }
 0x11a   :  { %v1770_v46 = vpop.f32.mrb[7].mxu1 }
 0x11b   :  { %v1133_v47 = vadd.f32 %v1768_v44, %v1093_v41 }
 0x143   :  { %v1172_v48 = vpop.f32.mrb[8].mxu1 }
 0x144   :  { %v1173_v49 = vadd.f32 %v1172_v48, %v1133_v47  ;;  %v1174_v50 = vpop.f32.mrb[9].mxu1 }
 0x145   :  { %v1175_v51 = vpop.f32.mrb[10].mxu1 }
 0x146   :  { %v1176_v52 = vpop.f32.mrb[11].mxu1  ;;  %v1180_v9 = vmax.f32 %v1173_v49, 0.0 }
 0x148   :  { %v1186_v12 = vmul.f32 %v1183_v11, %v1180_v9 }
 0x14a   :  { %v1189_v15 = vpack.c.bf16 %v1186_v12, %v1186_v12 }
 0x181   :  { %v1051_v57 = vpop.f32.mrb[0].mxu0 }
 0x182   :  { %v1834_v58 = vadd.f32 %v1051_v57, %v209_v55  ;;  %v1053_v59 = vpop.f32.mrb[1].mxu0 }
 0x183   :  { %v1835_v61 = vadd.f32 %v1053_v59, %v213_v56  ;;  %v1055_v62 = vpop.f32.mrb[2].mxu0 }
 0x184   :  { %v1178_v63 = vmax.f32 %v1834_v58, 0.0  ;;  %v1056_v1 = vpop.f32.mrb[3].mxu0 }
 0x185   :  { %v1179_v2 = vmax.f32 %v1835_v61, 0.0 }
 0x186   :  { %v1184_v3 = vmul.f32 %v1181_v60, %v1178_v63 }
 0x187   :  { %v1185_v4 = vmul.f32 %v1182_v0, %v1179_v2 }
 0x188   :  { %v1187_v7 = vpack.c.bf16 %v1184_v3, %v1184_v3 }
 0x189   :  { %v1188_v5 = vpack.c.bf16 %v1185_v4, %v1185_v4 }
 0x18b   :  { %1388 = vmatprep.mubr.bf16.mxu1 %v1188_v5 }
 0x18c   :  { %1389 = vmatmul.mubr.bf16.vlgmr.msra.gmra.mrb[12].mxu1 %v1187_v7 }
 0x18d   :  { %1807 = vmatpush3.bf16.msra.mxu1 %v2041_v6  ;;  %1812 = vmatprep.mubr.msk.bf16.mxu1 %vm2077_vm2, %v2076_v36 }
 0x18e   :  { %1808 = vmatprep.subr.bf16.mxu1 %v2076_v36 }
 0x191   :  { %1809 = vmatpush3.bf16.msra.mxu1 %v2042_v8 }
 0x192   :  { %1810 = vmatprep.subr.bf16.mxu1 %v2076_v36 }
 0x195   :  { %1811 = vmatpush3.bf16.msra.mxu1 %v1354_v13 }
 0x196   :  { %1816 = vmatprep.subr.bf16.mxu1 %v2076_v36 }
 0x198   :  { %1813 = vmatmul.mubr.msk.bf16.vlgmr.msra.gmra.mrb[16].mxu1 %vm1348_vm4, %v1189_v15 }
 0x199   :  { %1817 = vmatpush3.bf16.msra.mxu1 %v2044_v14  ;;  %1830 = vmatprep.mubr.msk.bf16.mxu1 %vm2077_vm2, %v2076_v36 }
 0x19a   :  { %1818 = vmatprep.subr.bf16.mxu1 %v2076_v36 }
 0x19d   :  { %1819 = vmatpush3.bf16.msra.mxu1 %v2045_v16 }
 0x19e   :  { %1820 = vmatprep.subr.bf16.mxu1 %v2076_v36 }
 0x1a1   :  { %1821 = vmatpush3.bf16.msra.mxu1 %v2046_v17 }
 0x1a2   :  { %1822 = vmatprep.subr.bf16.mxu1 %v2076_v36 }
 0x1a5   :  { %1823 = vmatpush3.bf16.msra.mxu1 %v2047_v18 }
 0x1a6   :  { %1824 = vmatprep.subr.bf16.mxu1 %v2076_v36 }
 0x1a9   :  { %1825 = vmatpush3.bf16.msra.mxu1 %v2048_v19 }
 0x1aa   :  { %1826 = vmatprep.subr.bf16.mxu1 %v2076_v36 }
 0x1ad   :  { %1827 = vmatpush3.bf16.msra.mxu1 %v2049_v20 }
 0x1ae   :  { %1828 = vmatprep.subr.bf16.mxu1 %v2076_v36 }
 0x1b1   :  { %1829 = vmatpush3.bf16.msra.mxu1 %v1502_v22 }
 0x25f   :  { %v1788_v23 = vpop.f32.mrb[12].mxu1 }
 0x260   :  { %v1789_v24 = vpop.f32.mrb[13].mxu1 }
 0x261   :  { %v1790_v25 = vadd.f32 %v1789_v24, %v1788_v23  ;;  %v1791_v26 = vpop.f32.mrb[14].mxu1 }
 0x262   :  { %v1792_v27 = vpop.f32.mrb[15].mxu1 }
 0x263   :  { %v1391_v29 = vadd.f32 %v1790_v25, %v1698_v28 }
 0x26b   :  { %v1430_v30 = vpop.f32.mrb[16].mxu1 }
 0x26c   :  { %v1431_v31 = vadd.f32 %v1430_v30, %v1391_v29  ;;  %v1814_v32 = vpop.f32.mrb[17].mxu1 }
 0x26d   :  { %v1433_v33 = vpop.f32.mrb[18].mxu1 }
 0x26e   :  { %v1436_v34 = vmax.f32 %v1431_v31, 0.0  ;;  %v1815_v35 = vpop.f32.mrb[19].mxu1 }
 0x270   :  { %v1437_v36 = vpack.c.bf16 %v1436_v34, %v1436_v34 }
 0x272   :  { %1831 = vmatmul.mubr.msk.bf16.vlgmr.msra.gmra.mrb[20].mxu1 %vm1497_vm5, %v1437_v36 }
 0x345   :  { %v1538_v38 = vpop.f32.mrb[20].mxu1 }
 0x346   :  { %v1539_v39 = vadd.f32 %v1719_v37, %v1538_v38  ;;  %v1832_v40 = vpop.f32.mrb[21].mxu1 }
 0x347   :  { %v1541_v41 = vpop.f32.mrb[22].mxu1 }
 0x348   :  { %v1544_v42 = vmax.f32 %v1539_v39, 0.0  ;;  %v1833_v43 = vpop.f32.mrb[23].mxu1 }
 0x34a   :  { %1545 = vst [vmem:[#allocation2] sm:$0xff] %v1544_v42 }
 0x34b   :  { %2062 = shalt.err (!%p2059_p4)
}
 0x34c   :  { %s2063_s7 = scalar_lea.hbm %s2680_s8, 128 }
 0x34d   :  { %p2064_p5 = scmp.ne.s32.totalorder %s2680_s8, %s2063_s7  ;;  %p2067_p6 = scmp.lt.u32.totalorder %s2063_s7, %s2680_s8 }
 0x34f   :  { %p2069_p7 = pnand %p2067_p6, %p2064_p5 }
 0x351   :  { %2072 = shalt.err (!%p2069_p7)
}
 0x352   :  { %1555 = dma.vmem_to_hbm [thread:$0]  %s1553_s9, 128, %s2680_s8, [#allocation3]  }
 0x353   :  { %2073 = dma.done.wait [#allocation3], 128  }
 0x354   :  { %2074 = vsyncadd [#allocation3], 4294967168 }
 0x355   :  { %1559 = vsyncpa [#allocation3], 1 }

</bundles_post_ra>
